<compile_context>
chip_gen: v7x
topology: tpu7x:2x2x1
jax: 0.10.0
libtpu: 0.0.40
codegen_flags: <defaults>
</compile_context>

<pallas_src>
import functools

import jax
import jax.numpy as jnp
from jax.experimental import pallas as pl
from jax.experimental.pallas import tpu as pltpu


def _cdiv(a, b):
    return -(-a // b)


def _round_up(n, m):
    return _cdiv(n, m) * m


def _pick_batch_tiling(batch, tile_b):
    """Returns (tb rows per grid step, padded batch, number of grid steps)."""
    b8 = _round_up(batch, 8)
    if b8 <= 512:                       # tiny problem: one tile, <=7 padded rows
        return b8, b8, 1
    n = max(2, _cdiv(b8, max(8, tile_b)))
    if n % 2:                           # even #steps -> both TensorCores busy on v7x
        n += 1
    tb = _round_up(_cdiv(b8, n), 8)     # balanced tiles, padding waste < 8*n rows
    return tb, tb * n, n


def _vmem_limit_bytes(requested):
    """Generation-aware cap: ~30 MiB on 64 MiB-VMEM chips (v7x), 48 MiB otherwise."""
    cap_total = 128 << 20
    try:
        info = pltpu.get_tpu_info()
        cap_total = int(getattr(info, "vmem_capacity_bytes", cap_total) or cap_total)
    except Exception:
        pass
    hard_cap = (30 << 20) if cap_total <= (64 << 20) else (48 << 20)
    return int(min(max(requested, 8 << 20), hard_cap))


def _mlp_kernel(plan, keep0, n_lin, in_dim, f0_pad, out_dim, f_last_pad, *args):
    """Fused whole-MLP forward on one (tb, .) batch tile.

    args = (x_ref, w0, b0, ..., w_{n_lin-1}, b_{n_lin-1}, o_ref[, xpad_ref]).
    plan[i] = (apply_tanh, residual_indices, keep_output, dead_indices) is
    static Python data computed from the ORIGINAL shapes.
    """
    needs_pad = f0_pad > in_dim
    if needs_pad:
        xpad_ref = args[-1]
        args = args[:-1]
    x_ref = args[0]
    o_ref = args[-1]
    wb = args[1:-1]

    if needs_pad:
        # Zero the padded working tile, then drop the real columns in
        # (masked column store) -> lane-aligned 128-wide activation tile.
        xpad_ref[...] = jnp.zeros(xpad_ref.shape, jnp.float32)
        xpad_ref[:, :in_dim] = x_ref[...].astype(jnp.float32)
        x = xpad_ref[...]
    else:
        x = x_ref[...].astype(jnp.float32)

    acts = {}                         # only residuals with a later use are kept
    if keep0:
        acts[0] = x

    for li in range(n_lin):
        apply_tanh, res_idxs, keep_out, dead = plan[li]
        w = wb[2 * li][...]                       # (Fin_pad, Fout_pad), matmul dtype
        b = wb[2 * li + 1][...]                   # (1, Fout_pad), f32
        # MXU in bf16 (or f32), accumulate f32; elementwise stays f32 (v5e-safe).
        y = jnp.dot(x.astype(w.dtype), w, preferred_element_type=jnp.float32) + b
        if apply_tanh:
            y = jnp.tanh(y)                       # EUP, f32
        for ri in res_idxs:
            y = y + acts[ri]
        for ri in dead:                           # drop residuals after last use
            acts.pop(ri, None)
        if keep_out:
            acts[li + 1] = y
        x = y

    if out_dim < f_last_pad:                      # store only the real columns
        x = x[:, :out_dim]
    o_ref[...] = x.astype(o_ref.dtype)


def dnn_forward(x, params, layers, connections, *, tile_b=1024,
                matmul_dtype=jnp.bfloat16):
    """Replicates DNN.forward with a single fused Pallas kernel."""
    if len(connections) != len(layers):
        raise ValueError('Length of connections must match the number of layers')
    num_layers = len(layers)
    n_lin = num_layers - 1
    batch, in_dim = x.shape
    assert in_dim == layers[0]
    out_dim = layers[-1]

    # ---- static residual plan from ORIGINAL shapes (Python slicing semantics
    #      identical to `residual[-conn:]` + `x.shape == rsd.shape`) ----------
    base = []
    for i, conn in enumerate(connections[:n_lin]):
        apply_tanh = i < num_layers - 2
        o_d = layers[i + 1]
        candidates = list(range(i + 1))[-conn:]          # [-0:] == full list, as in torch
        res_idxs = tuple(j for j in candidates if layers[j] == o_d)
        base.append((apply_tanh, res_idxs))

    # ---- static liveness: keep an activation only while a later layer needs it
    last_use = {}
    for li, (_, ridx) in enumerate(base):
        for j in ridx:
            last_use[j] = li
    keep0 = 0 in last_use
    plan = []
    for li, (apply_tanh, ridx) in enumerate(base):
        keep_out = (li + 1) in last_use
        dead = tuple(j for j, lu in last_use.items() if lu == li)
        plan.append((apply_tanh, ridx, keep_out, dead))
    plan = tuple(plan)

    # ---- feature dims padded to 128 lanes for weights / working activations --
    pdims = [max(128, _round_up(d, 128)) for d in layers]

    # ---- batch tiling (adaptive, low padding waste, even #steps for v7x) -----
    tb, batch_p, ntiles = _pick_batch_tiling(batch, tile_b)

    x_p = x.astype(jnp.float32)
    if batch_p != batch:
        x_p = jnp.pad(x_p, ((0, batch_p - batch), (0, 0)))   # batch pad only

    flat_wb = []
    in_specs = [pl.BlockSpec((tb, in_dim), lambda i: (i, 0))]  # narrow, unpadded x
    for li, (w, b) in enumerate(params):
        kin, kout = layers[li], layers[li + 1]
        pw = jnp.pad(jnp.asarray(w, jnp.float32),
                     ((0, pdims[li] - kin), (0, pdims[li + 1] - kout))
                     ).astype(matmul_dtype)
        pb = jnp.pad(jnp.reshape(jnp.asarray(b, jnp.float32), (1, kout)),
                     ((0, 0), (0, pdims[li + 1] - kout)))
        flat_wb += [pw, pb]
        # Constant block index -> DMA'd once, VMEM-resident over the whole grid.
        in_specs.append(pl.BlockSpec((pdims[li], pdims[li + 1]), lambda i: (0, 0)))
        in_specs.append(pl.BlockSpec((1, pdims[li + 1]), lambda i: (0, 0)))
    out_specs = pl.BlockSpec((tb, out_dim), lambda i: (i, 0))   # narrow output slab

    # ---- cost estimate from ORIGINAL layer sizes -----------------------------
    wsize = jnp.dtype(matmul_dtype).itemsize
    flops = 2 * batch_p * sum(layers[i] * layers[i + 1] for i in range(n_lin))
    transc = batch_p * sum(layers[i + 1] for i in range(n_lin) if plan[i][0])
    w_hbm = (sum(pdims[i] * pdims[i + 1] for i in range(n_lin)) * wsize
             + 4 * sum(pdims[i + 1] for i in range(n_lin)))
    bytes_acc = 4 * batch_p * (in_dim + out_dim) + w_hbm
    cost = pl.CostEstimate(flops=flops, transcendentals=transc,
                           bytes_accessed=bytes_acc)

    # ---- VMEM budget (double-buffered IO blocks + resident weights + live acts)
    kept = {0} if keep0 else set()
    max_live = 1 + len(kept)
    for li, (_, _, keep_out, dead) in enumerate(plan):
        max_live = max(max_live, 1 + len(kept) + 1)        # x + kept + y
        for d in dead:
            kept.discard(d)
        if keep_out:
            kept.add(li + 1)
    fmax = max(pdims)
    act_bytes = max_live * tb * fmax * 4
    io_bytes = 2 * 4 * tb * (in_dim + out_dim)
    w_vmem = 2 * w_hbm
    pad_scratch = tb * pdims[0] * 4 if pdims[0] > in_dim else 0
    vmem_bytes = _vmem_limit_bytes(act_bytes + io_bytes + w_vmem + pad_scratch
                                   + (4 << 20))

    scratch_shapes = []
    if pdims[0] > in_dim:
        scratch_shapes.append(pltpu.VMEM((tb, pdims[0]), jnp.float32))

    kern = functools.partial(_mlp_kernel, plan, keep0, n_lin, in_dim, pdims[0],
                             out_dim, pdims[-1])
    out_p = pl.pallas_call(
        kern,
        out_shape=jax.ShapeDtypeStruct((batch_p, out_dim), jnp.float32),
        grid=(ntiles,),
        in_specs=in_specs,
        out_specs=out_specs,
        scratch_shapes=scratch_shapes,
        compiler_params=pltpu.CompilerParams(
            dimension_semantics=("parallel",),
            vmem_limit_bytes=vmem_bytes),
        cost_estimate=cost,
    )(x_p, *flat_wb)

    return out_p[:batch] if batch_p != batch else out_p


def dnn_forward_ref(x, params, layers, connections):
    """Pure-JAX reference (mirrors the PyTorch forward exactly)."""
    num_layers = len(layers)
    residual = [x]
    for i, ((w, b), conn) in enumerate(zip(params, connections)):
        x = x @ w + b
        if i < num_layers - 2:
            x = jnp.tanh(x)
        for rsd in residual[-conn:]:
            if x.shape == rsd.shape:
                x = x + rsd
        residual.append(x)
    return x


def init_params(key, layers):
    """Deterministic PyTorch-Linear-style init: U(-1/sqrt(fan_in), 1/sqrt(fan_in))."""
    params = []
    for i in range(len(layers) - 1):
        key, kw, kb = jax.random.split(key, 3)
        fan_in = layers[i]
        bound = 1.0 / float(fan_in) ** 0.5
        w = jax.random.uniform(kw, (layers[i], layers[i + 1]), jnp.float32,
                               minval=-bound, maxval=bound)
        b = jax.random.uniform(kb, (1, layers[i + 1]), jnp.float32,
                               minval=-bound, maxval=bound)
        params.append((w, b))
    return params


if __name__ == "__main__":
    # Small PINN-like configuration: 2 inputs (x, t), 3 hidden layers of 32, 1 output.
    layers = [2, 32, 32, 32, 1]
    connections = [1, 2, 2, 2, 1]

    key = jax.random.PRNGKey(0)
    key, kx1, kx2 = jax.random.split(key, 3)
    params = init_params(key, layers)

    # 1) Tiny batch, f32 matmul path -> bit-level agreement with the reference.
    x_small = jax.random.normal(kx1, (8, layers[0]), jnp.float32)
    out = jax.block_until_ready(
        dnn_forward(x_small, params, layers, connections,
                    matmul_dtype=jnp.float32))
    ref = dnn_forward_ref(x_small, params, layers, connections)
    assert out.shape == (8, layers[-1])
    assert jnp.allclose(out, ref, atol=1e-5, rtol=1e-5), "f32 small-batch mismatch"

    # 2) Larger batch exercising the multi-tile (even-step) grid + batch padding.
    x_big = jax.random.normal(kx2, (700, layers[0]), jnp.float32)
    out_big = jax.block_until_ready(
        dnn_forward(x_big, params, layers, connections,
                    matmul_dtype=jnp.float32))
    ref_big = dnn_forward_ref(x_big, params, layers, connections)
    assert out_big.shape == (700, layers[-1])
    assert jnp.allclose(out_big, ref_big, atol=1e-5, rtol=1e-5), "f32 big-batch mismatch"

    # 3) Default bf16-matmul path (f32 accumulation + f32 elementwise); loose check.
    out_bf16 = jax.block_until_ready(
        dnn_forward(x_big, params, layers, connections))
    assert out_bf16.shape == (700, layers[-1])
    assert jnp.allclose(out_bf16, ref_big, atol=5e-2, rtol=5e-2), "bf16 path mismatch"

    print("KERNEL_OK")
</pallas_src>

<mosaic_0001>
module attributes {stable_mosaic.version = 11 : i64} {
  func.func @_mlp_kernel(%arg0: i32, %arg1: memref<8x2xf32, #tpu.memory_space<vmem>>, %arg2: memref<128x128xf32, #tpu.memory_space<vmem>>, %arg3: memref<1x128xf32, #tpu.memory_space<vmem>>, %arg4: memref<128x128xf32, #tpu.memory_space<vmem>>, %arg5: memref<1x128xf32, #tpu.memory_space<vmem>>, %arg6: memref<128x128xf32, #tpu.memory_space<vmem>>, %arg7: memref<1x128xf32, #tpu.memory_space<vmem>>, %arg8: memref<128x128xf32, #tpu.memory_space<vmem>>, %arg9: memref<1x128xf32, #tpu.memory_space<vmem>>, %arg10: memref<8x1xf32, #tpu.memory_space<vmem>>, %arg11: memref<8x128xf32, #tpu.memory_space<vmem>>) attributes {dimension_semantics = [#tpu.dimension_semantics<parallel>], iteration_bounds = array<i64: 1>, scalar_prefetch = 0 : i64, scratch_operands = 1 : i64, tpu.core_type = #tpu.core_type<tc>, window_params = [{transform_indices = @transform_0, window_bounds = array<i64: 8, 2>}, {pipeline_mode = #tpu.pipeline_mode<synchronous>, transform_indices = @transform_1, window_bounds = array<i64: 128, 128>}, {pipeline_mode = #tpu.pipeline_mode<synchronous>, transform_indices = @transform_2, window_bounds = array<i64: 1, 128>}, {pipeline_mode = #tpu.pipeline_mode<synchronous>, transform_indices = @transform_3, window_bounds = array<i64: 128, 128>}, {pipeline_mode = #tpu.pipeline_mode<synchronous>, transform_indices = @transform_4, window_bounds = array<i64: 1, 128>}, {pipeline_mode = #tpu.pipeline_mode<synchronous>, transform_indices = @transform_5, window_bounds = array<i64: 128, 128>}, {pipeline_mode = #tpu.pipeline_mode<synchronous>, transform_indices = @transform_6, window_bounds = array<i64: 1, 128>}, {pipeline_mode = #tpu.pipeline_mode<synchronous>, transform_indices = @transform_7, window_bounds = array<i64: 128, 128>}, {pipeline_mode = #tpu.pipeline_mode<synchronous>, transform_indices = @transform_8, window_bounds = array<i64: 1, 128>}, {transform_indices = @transform_9, window_bounds = array<i64: 8, 1>}]} {
    %cst = arith.constant 0.000000e+00 : f32
    %0 = vector.broadcast %cst : f32 to vector<8x128xf32>
    %c0 = arith.constant 0 : index
    %c0_0 = arith.constant 0 : index
    %1 = vector.load %arg11[%c0, %c0_0] : memref<8x128xf32, #tpu.memory_space<vmem>>, vector<8x128xf32>
    tpu.vector_store %arg11[%c0, %c0_0], %0 {strides = array<i32>} : memref<8x128xf32, #tpu.memory_space<vmem>>, vector<8x128xf32>,
    %c0_1 = arith.constant 0 : index
    %c0_2 = arith.constant 0 : index
    %2 = vector.load %arg1[%c0_1, %c0_2] : memref<8x2xf32, #tpu.memory_space<vmem>>, vector<8x2xf32>
    %c0_3 = arith.constant 0 : index
    %c0_4 = arith.constant 0 : index
    %3 = vector.load %arg11[%c0_3, %c0_4] : memref<8x128xf32, #tpu.memory_space<vmem>>, vector<8x2xf32>
    tpu.vector_store %arg11[%c0_3, %c0_4], %2 {strides = array<i32>} : memref<8x128xf32, #tpu.memory_space<vmem>>, vector<8x2xf32>,
    %c0_5 = arith.constant 0 : index
    %c0_6 = arith.constant 0 : index
    %4 = vector.load %arg11[%c0_5, %c0_6] : memref<8x128xf32, #tpu.memory_space<vmem>>, vector<8x128xf32>
    %c0_7 = arith.constant 0 : index
    %c0_8 = arith.constant 0 : index
    %5 = vector.load %arg2[%c0_7, %c0_8] : memref<128x128xf32, #tpu.memory_space<vmem>>, vector<128x128xf32>
    %c0_9 = arith.constant 0 : index
    %c0_10 = arith.constant 0 : index
    %6 = vector.load %arg3[%c0_9, %c0_10] : memref<1x128xf32, #tpu.memory_space<vmem>>, vector<1x128xf32>
    %cst_11 = arith.constant dense<0.000000e+00> : vector<8x128xf32>
    %7 = tpu.matmul %4, %5, %cst_11 {dimension_numbers = #tpu.dot_dimension_numbers<[1], [0], [0], [1], [0, 0, 1, 1], [], []>} : vector<8x128xf32>, vector<128x128xf32>, vector<8x128xf32> -> vector<8x128xf32>
    %8 = vector.broadcast %6 : vector<1x128xf32> to vector<8x128xf32>
    %9 = arith.addf %7, %8 : vector<8x128xf32>
    %10 = math.tanh %9 : vector<8x128xf32>
    %c0_12 = arith.constant 0 : index
    %c0_13 = arith.constant 0 : index
    %11 = vector.load %arg4[%c0_12, %c0_13] : memref<128x128xf32, #tpu.memory_space<vmem>>, vector<128x128xf32>
    %c0_14 = arith.constant 0 : index
    %c0_15 = arith.constant 0 : index
    %12 = vector.load %arg5[%c0_14, %c0_15] : memref<1x128xf32, #tpu.memory_space<vmem>>, vector<1x128xf32>
    %cst_16 = arith.constant dense<0.000000e+00> : vector<8x128xf32>
    %13 = tpu.matmul %10, %11, %cst_16 {dimension_numbers = #tpu.dot_dimension_numbers<[1], [0], [0], [1], [0, 0, 1, 1], [], []>} : vector<8x128xf32>, vector<128x128xf32>, vector<8x128xf32> -> vector<8x128xf32>
    %14 = vector.broadcast %12 : vector<1x128xf32> to vector<8x128xf32>
    %15 = arith.addf %13, %14 : vector<8x128xf32>
    %16 = math.tanh %15 : vector<8x128xf32>
    %17 = arith.addf %16, %10 : vector<8x128xf32>
    %c0_17 = arith.constant 0 : index
    %c0_18 = arith.constant 0 : index
    %18 = vector.load %arg6[%c0_17, %c0_18] : memref<128x128xf32, #tpu.memory_space<vmem>>, vector<128x128xf32>
    %c0_19 = arith.constant 0 : index
    %c0_20 = arith.constant 0 : index
    %19 = vector.load %arg7[%c0_19, %c0_20] : memref<1x128xf32, #tpu.memory_space<vmem>>, vector<1x128xf32>
    %cst_21 = arith.constant dense<0.000000e+00> : vector<8x128xf32>
    %20 = tpu.matmul %17, %18, %cst_21 {dimension_numbers = #tpu.dot_dimension_numbers<[1], [0], [0], [1], [0, 0, 1, 1], [], []>} : vector<8x128xf32>, vector<128x128xf32>, vector<8x128xf32> -> vector<8x128xf32>
    %21 = vector.broadcast %19 : vector<1x128xf32> to vector<8x128xf32>
    %22 = arith.addf %20, %21 : vector<8x128xf32>
    %23 = math.tanh %22 : vector<8x128xf32>
    %24 = arith.addf %23, %10 : vector<8x128xf32>
    %25 = arith.addf %24, %17 : vector<8x128xf32>
    %c0_22 = arith.constant 0 : index
    %c0_23 = arith.constant 0 : index
    %26 = vector.load %arg8[%c0_22, %c0_23] : memref<128x128xf32, #tpu.memory_space<vmem>>, vector<128x128xf32>
    %c0_24 = arith.constant 0 : index
    %c0_25 = arith.constant 0 : index
    %27 = vector.load %arg9[%c0_24, %c0_25] : memref<1x128xf32, #tpu.memory_space<vmem>>, vector<1x128xf32>
    %cst_26 = arith.constant dense<0.000000e+00> : vector<8x128xf32>
    %28 = tpu.matmul %25, %26, %cst_26 {dimension_numbers = #tpu.dot_dimension_numbers<[1], [0], [0], [1], [0, 0, 1, 1], [], []>} : vector<8x128xf32>, vector<128x128xf32>, vector<8x128xf32> -> vector<8x128xf32>
    %29 = vector.broadcast %27 : vector<1x128xf32> to vector<8x128xf32>
    %30 = arith.addf %28, %29 : vector<8x128xf32>
    %31 = vector.extract_strided_slice %30 {offsets = [0, 0], sizes = [8, 1], strides = [1, 1]} : vector<8x128xf32> to vector<8x1xf32>
    %c0_27 = arith.constant 0 : index
    %c0_28 = arith.constant 0 : index
    %32 = vector.load %arg10[%c0_27, %c0_28] : memref<8x1xf32, #tpu.memory_space<vmem>>, vector<8x1xf32>
    tpu.vector_store %arg10[%c0_27, %c0_28], %31 {strides = array<i32>} : memref<8x1xf32, #tpu.memory_space<vmem>>, vector<8x1xf32>,
    return
  }
  func.func @transform_0(%arg0: i32) -> (i32, i32) {
    %c0_i32 = arith.constant 0 : i32
    %c0_i32_0 = arith.constant 0 : i32
    return %arg0, %c0_i32 : i32, i32
  }
  func.func @transform_1(%arg0: i32) -> (i32, i32) {
    %c0_i32 = arith.constant 0 : i32
    %c0_i32_0 = arith.constant 0 : i32
    %c0_i32_1 = arith.constant 0 : i32
    return %c0_i32, %c0_i32_0 : i32, i32
  }
  func.func @transform_2(%arg0: i32) -> (i32, i32) {
    %c0_i32 = arith.constant 0 : i32
    %c0_i32_0 = arith.constant 0 : i32
    %c0_i32_1 = arith.constant 0 : i32
    return %c0_i32, %c0_i32_0 : i32, i32
  }
  func.func @transform_3(%arg0: i32) -> (i32, i32) {
    %c0_i32 = arith.constant 0 : i32
    %c0_i32_0 = arith.constant 0 : i32
    %c0_i32_1 = arith.constant 0 : i32
    return %c0_i32, %c0_i32_0 : i32, i32
  }
  func.func @transform_4(%arg0: i32) -> (i32, i32) {
    %c0_i32 = arith.constant 0 : i32
    %c0_i32_0 = arith.constant 0 : i32
    %c0_i32_1 = arith.constant 0 : i32
    return %c0_i32, %c0_i32_0 : i32, i32
  }
  func.func @transform_5(%arg0: i32) -> (i32, i32) {
    %c0_i32 = arith.constant 0 : i32
    %c0_i32_0 = arith.constant 0 : i32
    %c0_i32_1 = arith.constant 0 : i32
    return %c0_i32, %c0_i32_0 : i32, i32
  }
  func.func @transform_6(%arg0: i32) -> (i32, i32) {
    %c0_i32 = arith.constant 0 : i32
    %c0_i32_0 = arith.constant 0 : i32
    %c0_i32_1 = arith.constant 0 : i32
    return %c0_i32, %c0_i32_0 : i32, i32
  }
  func.func @transform_7(%arg0: i32) -> (i32, i32) {
    %c0_i32 = arith.constant 0 : i32
    %c0_i32_0 = arith.constant 0 : i32
    %c0_i32_1 = arith.constant 0 : i32
    return %c0_i32, %c0_i32_0 : i32, i32
  }
  func.func @transform_8(%arg0: i32) -> (i32, i32) {
    %c0_i32 = arith.constant 0 : i32
    %c0_i32_0 = arith.constant 0 : i32
    %c0_i32_1 = arith.constant 0 : i32
    return %c0_i32, %c0_i32_0 : i32, i32
  }
  func.func @transform_9(%arg0: i32) -> (i32, i32) {
    %c0_i32 = arith.constant 0 : i32
    %c0_i32_0 = arith.constant 0 : i32
    return %arg0, %c0_i32 : i32, i32
  }
}

</mosaic_0001>

<bundles_post_ra>
// kernel: tpu_custom_call.1
= control target key start
LH: loop header
LB: loop body
LE: loop exit
PB: predicated region body
PF: predicated region fallthrough
CT: control target
= control target key end

     0   :  { %14 = vsyncpa [#allocation4], 0  ;;  %s1093_s0 = inlined_call_operand.vmem [shape: f32[8,2], index: 0, kind: input, shape index: {}]   ;;  %s1094_s1 = inlined_call_operand.hbm [shape: f32[128,128], index: 1, kind: input, shape index: {}]   ;;  %s1095_s2 = inlined_call_operand.vmem [shape: f32[1,128], index: 2, kind: input, shape index: {}]   ;;  %s1096_s3 = inlined_call_operand.hbm [shape: f32[128,128], index: 3, kind: input, shape index: {}]   ;;  %s1097_s4 = inlined_call_operand.vmem [shape: f32[1,128], index: 4, kind: input, shape index: {}]   ;;  %s1098_s5 = inlined_call_operand.hbm [shape: f32[128,128], index: 5, kind: input, shape index: {}]   ;;  %s1099_s6 = inlined_call_operand.vmem [shape: f32[1,128], index: 6, kind: input, shape index: {}]   ;;  %s1100_s7 = inlined_call_operand.hbm [shape: f32[128,128], index: 7, kind: input, shape index: {}]   ;;  %s1101_s8 = inlined_call_operand.vmem [shape: f32[1,128], index: 8, kind: input, shape index: {}]   ;;  %s1102_s9 = inlined_call_operand.vmem [shape: f32[8,1], index: 9, kind: output, shape index: {}]  }
   0x1   :  { %15 = vsyncpa [#allocation6], 0 }
   0x2   :  { %16 = vsyncpa [#allocation9], 0  ;;  %s896_s30 = smov [#allocation5]   ;;  %s897_s11 = smov [#allocation3]  }
   0x3   :  { %s38_s10 = sshll.u32 %s896_s30, 4  ;;  %s24_s12 = sshll.u32 %s897_s11, 4  ;;  %s39_s10 = int_to_ptr.vmem [resolvable:$true] %s38_s10  ;;  %s955_s12 = int_to_ptr.vmem [resolvable:$true] %s24_s12 }
   0x4   :  { %s802_s15 = scalar_lea.hbm %s1096_s3, 2048 }
   0x5   :  { %p803_p0 = scmp.ne.s32.totalorder %s1096_s3, %s802_s15  ;;  %p806_p1 = scmp.lt.u32.totalorder %s802_s15, %s1096_s3 }
   0x7   :  { %p808_p2 = pnand %p806_p1, %p803_p0 }
   0x9   :  { %811 = shalt.err (!%p808_p2)
}
   0xa   :  { %s812_s20 = scalar_lea.vmem %s39_s10, 2048  ;;  %p817_p4 = scmp.lt.s32.totalorder %s39_s10, %s39_s10 }
   0xb   :  { %p813_p3 = scmp.ne.s32.totalorder %s39_s10, %s812_s20  ;;  %p818_p5 = scmp.lt.s32.totalorder %s812_s20, %s812_s20 }
   0xd   :  { %p819_p6 = por %p818_p5, %p817_p4 }
   0xf   :  { %p820_p7 = pnand %p819_p6, %p813_p3 }
  0x11   :  { %823 = shalt.err (!%p820_p7)
}
  0x12   :  { %s898_s21 = smov 128   ;;  %s899_s22 = smov 8  }
  0x13   :  { %44 = dma.hbm_to_vmem [thread:$0]  %s1096_s3, 2048, %s39_s10, [#allocation6], %s898_s21, %s898_s21, %s899_s22  }
  0x14   :  { %s824_s27 = scalar_lea.hbm %s1094_s1, 2048 }
  0x15   :  { %p825_p8 = scmp.ne.s32.totalorder %s1094_s1, %s824_s27  ;;  %p828_p9 = scmp.lt.u32.totalorder %s824_s27, %s1094_s1 }
  0x17   :  { %p830_p10 = pnand %p828_p9, %p825_p8 }
  0x19   :  { %833 = shalt.err (!%p830_p10)
}
  0x1a   :  { %s834_s13 = scalar_lea.vmem %s955_s12, 2048  ;;  %p839_p12 = scmp.lt.s32.totalorder %s955_s12, %s955_s12 }
  0x1b   :  { %p835_p11 = scmp.ne.s32.totalorder %s955_s12, %s834_s13  ;;  %p840_p13 = scmp.lt.s32.totalorder %s834_s13, %s834_s13 }
  0x1d   :  { %p841_p0 = por %p840_p13, %p839_p12 }
  0x1f   :  { %p842_p1 = pnand %p841_p0, %p835_p11 }
  0x21   :  { %845 = shalt.err (!%p842_p1)
}
  0x22   :  { %30 = dma.hbm_to_vmem [thread:$0]  %s1094_s1, 2048, %s955_s12, [#allocation4], %s898_s21, %s898_s21, %s899_s22  }
  0x23   :  { %s900_s14 = smov [#allocation7]   ;;  %s901_s16 = smov [#allocation8]  }
  0x24   :  { %s52_s15 = sshll.u32 %s900_s14, 4  ;;  %s66_s17 = sshll.u32 %s901_s16, 4  ;;  %s53_s15 = int_to_ptr.vmem [resolvable:$true] %s52_s15  ;;  %s992_s17 = int_to_ptr.vmem [resolvable:$true] %s66_s17 }
  0x25   :  { %s846_s20 = scalar_lea.hbm %s1098_s5, 2048 }
  0x26   :  { %p847_p2 = scmp.ne.s32.totalorder %s1098_s5, %s846_s20  ;;  %p850_p3 = scmp.lt.u32.totalorder %s846_s20, %s1098_s5 }
  0x28   :  { %p852_p4 = pnand %p850_p3, %p847_p2 }
  0x2a   :  { %855 = shalt.err (!%p852_p4)
}
  0x2b   :  { %s856_s1 = scalar_lea.vmem %s53_s15, 2048  ;;  %p861_p6 = scmp.lt.s32.totalorder %s53_s15, %s53_s15 }
  0x2c   :  { %p857_p5 = scmp.ne.s32.totalorder %s53_s15, %s856_s1  ;;  %p862_p7 = scmp.lt.s32.totalorder %s856_s1, %s856_s1 }
  0x2e   :  { %p863_p8 = por %p862_p7, %p861_p6 }
  0x30   :  { %p864_p9 = pnand %p863_p8, %p857_p5 }
  0x32   :  { %867 = shalt.err (!%p864_p9)
}
  0x33   :  { %58 = dma.hbm_to_vmem [thread:$0]  %s1098_s5, 2048, %s53_s15, [#allocation6], %s898_s21, %s898_s21, %s899_s22  }
  0x34   :  { %s868_s30 = scalar_lea.hbm %s1100_s7, 2048 }
  0x35   :  { %p869_p10 = scmp.ne.s32.totalorder %s1100_s7, %s868_s30  ;;  %p872_p11 = scmp.lt.u32.totalorder %s868_s30, %s1100_s7 }
  0x37   :  { %p874_p12 = pnand %p872_p11, %p869_p10 }
  0x39   :  { %877 = shalt.err (!%p874_p12)
}
  0x3a   :  { %s878_s14 = scalar_lea.vmem %s992_s17, 2048  ;;  %p883_p0 = scmp.lt.s32.totalorder %s992_s17, %s992_s17 }
  0x3b   :  { %p879_p13 = scmp.ne.s32.totalorder %s992_s17, %s878_s14  ;;  %p884_p1 = scmp.lt.s32.totalorder %s878_s14, %s878_s14 }
  0x3d   :  { %p885_p2 = por %p884_p1, %p883_p0 }
  0x3f   :  { %p886_p3 = pnand %p885_p2, %p879_p13 }
  0x41   :  { %889 = shalt.err (!%p886_p3)
}
  0x42   :  { %72 = dma.hbm_to_vmem [thread:$0]  %s1100_s7, 2048, %s992_s17, [#allocation9], %s898_s21, %s898_s21, %s899_s22  }
  0x43   :  { %890 = dma.done.wait [#allocation4], 2048  }
  0x44   :  { %891 = vsyncadd [#allocation4], 4294965248 }
  0x45   :  { %892 = dma.done.wait [#allocation6], 4096  }
  0x46   :  { %893 = vsyncadd [#allocation6], 4294963200 }
  0x47   :  { %894 = dma.done.wait [#allocation9], 2048  }
  0x48   :  { %895 = vsyncadd [#allocation9], 4294965248  ;;  %v902_v0 = vmov 0.0|0.0   ;;  %v903_v1 = vmov 0.0   ;;  %vm904_vm0 = vmmov 0   ;;  %v92_v2 = vld [vmem:[#allocation3] sm:$0xff] }
  0x49   :  { %691 = vmatprep.subr.bf16.mxu0 %v902_v0  ;;  %87 = vst [vmem:[#allocation2] sm:$0xff] %v903_v1  ;;  %583 = vmatprep.mubr.msk.f32.mxu0 %vm904_vm0, %v903_v1  ;;  %v93_v3 = vld [vmem:[#allocation3 + $0x8] sm:$0xff]  ;;  %v94_v4 = vld [vmem:[#allocation3 + $0x10] sm:$0xff]  ;;  %v95_v6 = vld [vmem:[#allocation3 + $0x18] sm:$0xff]  ;;  %vm89_vm1 = vcmask 15360   ;;  %vm470_vm2 = vcmask 7168  }
  0x4a   :  { %715 = vmatprep.subr.bf16.mxu1 %v902_v0  ;;  %618 = vmatprep.mubr.msk.f32.mxu1 %vm904_vm0, %v903_v1  ;;  %v692_v5 = vpack.c.bf16 %v93_v3, %v92_v2  ;;  %v695_v7 = vpack.c.bf16 %v95_v6, %v94_v4  ;;  %v96_v8 = vld [vmem:[#allocation3 + $0x20] sm:$0xff]  ;;  %v97_v9 = vld [vmem:[#allocation3 + $0x28] sm:$0xff]  ;;  %v88_v10 = vld [vmem:[%s1093_s0] sm:$0xff] }
  0x4b   :  { %v186_v11 = vld [vmem:[#allocation5] sm:$0xff]  ;;  %90 = vst.msk [vmem:[#allocation2] sm:$0xff] %vm89_vm1, %v88_v10  ;;  %v187_v12 = vld [vmem:[#allocation5 + $0x8] sm:$0xff]  ;;  %v188_v13 = vld [vmem:[#allocation5 + $0x10] sm:$0xff]  ;;  %v698_v15 = vpack.c.bf16 %v97_v9, %v96_v8 }
  0x4c   :  { %693 = vmatpush3.bf16.msra.mxu0 %v692_v5  ;;  %v189_v14 = vld [vmem:[#allocation5 + $0x18] sm:$0xff]  ;;  %v716_v16 = vpack.c.bf16 %v187_v12, %v186_v11  ;;  %v98_v17 = vld [vmem:[#allocation3 + $0x30] sm:$0xff]  ;;  %v190_v20 = vld [vmem:[#allocation5 + $0x20] sm:$0xff] }
  0x4d   :  { %694 = vmatprep.subr.bf16.mxu0 %v902_v0  ;;  %v99_v18 = vld [vmem:[#allocation3 + $0x38] sm:$0xff]  ;;  %v719_v19 = vpack.c.bf16 %v189_v14, %v188_v13  ;;  %v191_v21 = vld [vmem:[#allocation5 + $0x28] sm:$0xff]  ;;  %v100_v23 = vld [vmem:[#allocation3 + $0x40] sm:$0xff] }
  0x4e   :  { %717 = vmatpush3.bf16.msra.mxu1 %v716_v16  ;;  %v701_v22 = vpack.c.bf16 %v99_v18, %v98_v17  ;;  %v101_v24 = vld [vmem:[#allocation3 + $0x48] sm:$0xff]  ;;  %v722_v25 = vpack.c.bf16 %v191_v21, %v190_v20  ;;  %v192_v26 = vld [vmem:[#allocation5 + $0x30] sm:$0xff]  ;;  %v193_v27 = vld [vmem:[#allocation5 + $0x38] sm:$0xff] }
  0x4f   :  { %718 = vmatprep.subr.bf16.mxu1 %v902_v0  ;;  %v704_v28 = vpack.c.bf16 %v101_v24, %v100_v23  ;;  %v102_v29 = vld [vmem:[#allocation3 + $0x50] sm:$0xff]  ;;  %v103_v30 = vld [vmem:[#allocation3 + $0x58] sm:$0xff]  ;;  %v725_v31 = vpack.c.bf16 %v193_v27, %v192_v26  ;;  %v194_v32 = vld [vmem:[#allocation5 + $0x40] sm:$0xff] }
  0x50   :  { %696 = vmatpush3.bf16.msra.mxu0 %v695_v7  ;;  %v195_v33 = vld [vmem:[#allocation5 + $0x48] sm:$0xff]  ;;  %v707_v34 = vpack.c.bf16 %v103_v30, %v102_v29  ;;  %v104_v35 = vld [vmem:[#allocation3 + $0x60] sm:$0xff]  ;;  %v106_v39 = vld [vmem:[#allocation3 + $0x70] sm:$0xff] }
  0x51   :  { %697 = vmatprep.subr.bf16.mxu0 %v902_v0  ;;  %v105_v36 = vld [vmem:[#allocation3 + $0x68] sm:$0xff]  ;;  %v728_v37 = vpack.c.bf16 %v195_v33, %v194_v32  ;;  %v107_v40 = vld [vmem:[#allocation3 + $0x78] sm:$0xff]  ;;  %v196_v43 = vld [vmem:[#allocation5 + $0x50] sm:$0xff] }
  0x52   :  { %720 = vmatpush3.bf16.msra.mxu1 %v719_v19  ;;  %v710_v38 = vpack.c.bf16 %v105_v36, %v104_v35  ;;  %v713_v41 = vpack.c.bf16 %v107_v40, %v106_v39  ;;  %v91_v42 = vld [vmem:[#allocation2] sm:$0xff]  ;;  %v198_v46 = vld [vmem:[#allocation5 + $0x60] sm:$0xff]  ;;  %v199_v47 = vld [vmem:[#allocation5 + $0x68] sm:$0xff] }
  0x53   :  { %721 = vmatprep.subr.bf16.mxu1 %v902_v0  ;;  %v197_v44 = vld [vmem:[#allocation5 + $0x58] sm:$0xff]  ;;  %v734_v48 = vpack.c.bf16 %v199_v47, %v198_v46  ;;  %v200_v49 = vld [vmem:[#allocation5 + $0x70] sm:$0xff]  ;;  %v281_v52 = vld [vmem:[#allocation7] sm:$0xff] }
  0x54   :  { %699 = vmatpush3.bf16.msra.mxu0 %v698_v15  ;;  %v731_v45 = vpack.c.bf16 %v197_v44, %v196_v43  ;;  %v201_v50 = vld [vmem:[#allocation5 + $0x78] sm:$0xff]  ;;  %v282_v53 = vld [vmem:[#allocation7 + $0x8] sm:$0xff]  ;;  %v283_v54 = vld [vmem:[#allocation7 + $0x10] sm:$0xff] }
  0x55   :  { %700 = vmatprep.subr.bf16.mxu0 %v902_v0  ;;  %v737_v51 = vpack.c.bf16 %v201_v50, %v200_v49  ;;  %v740_v55 = vpack.c.bf16 %v282_v53, %v281_v52  ;;  %v284_v56 = vld [vmem:[#allocation7 + $0x18] sm:$0xff]  ;;  %v285_v58 = vld [vmem:[#allocation7 + $0x20] sm:$0xff]  ;;  %v286_v59 = vld [vmem:[#allocation7 + $0x28] sm:$0xff] }
  0x56   :  { %723 = vmatpush3.bf16.msra.mxu1 %v722_v25  ;;  %v743_v57 = vpack.c.bf16 %v284_v56, %v283_v54  ;;  %v746_v60 = vpack.c.bf16 %v286_v59, %v285_v58  ;;  %v287_v61 = vld [vmem:[#allocation7 + $0x30] sm:$0xff]  ;;  %v288_v62 = vld [vmem:[#allocation7 + $0x38] sm:$0xff]  ;;  %v289_v7 = vld [vmem:[#allocation7 + $0x40] sm:$0xff] }
  0x57   :  { %724 = vmatprep.subr.bf16.mxu1 %v902_v0  ;;  %v749_v63 = vpack.c.bf16 %v288_v62, %v287_v61  ;;  %v479_v2 = vld [vmem:[%s1095_s2] ss:$0 sm:$0xff]  ;;  %v290_v8 = vld [vmem:[#allocation7 + $0x48] sm:$0xff]  ;;  %v291_v10 = vld [vmem:[#allocation7 + $0x50] sm:$0xff] }
  0x58   :  { %702 = vmatpush3.bf16.msra.mxu0 %v701_v22  ;;  %v752_v9 = vpack.c.bf16 %v290_v8, %v289_v7  ;;  %v292_v11 = vld [vmem:[#allocation7 + $0x58] sm:$0xff]  ;;  %v293_v13 = vld [vmem:[#allocation7 + $0x60] sm:$0xff]  ;;  %v294_v14 = vld [vmem:[#allocation7 + $0x68] sm:$0xff] }
  0x59   :  { %703 = vmatprep.subr.bf16.mxu0 %v902_v0  ;;  %v755_v12 = vpack.c.bf16 %v292_v11, %v291_v10  ;;  %v758_v15 = vpack.c.bf16 %v294_v14, %v293_v13  ;;  %v295_v16 = vld [vmem:[#allocation7 + $0x70] sm:$0xff]  ;;  %v296_v17 = vld [vmem:[#allocation7 + $0x78] sm:$0xff]  ;;  %v378_v19 = vld [vmem:[#allocation8 + $0x8] sm:$0xff] }
  0x5a   :  { %726 = vmatpush3.bf16.msra.mxu1 %v725_v31  ;;  %v761_v18 = vpack.c.bf16 %v296_v17, %v295_v16  ;;  %v379_v20 = vld [vmem:[#allocation8 + $0x10] sm:$0xff]  ;;  %v380_v22 = vld [vmem:[#allocation8 + $0x18] sm:$0xff]  ;;  %v381_v24 = vld [vmem:[#allocation8 + $0x20] sm:$0xff] }
  0x5b   :  { %727 = vmatprep.subr.bf16.mxu1 %v902_v0  ;;  %v767_v23 = vpack.c.bf16 %v380_v22, %v379_v20  ;;  %v382_v25 = vld [vmem:[#allocation8 + $0x28] sm:$0xff]  ;;  %v383_v27 = vld [vmem:[#allocation8 + $0x30] sm:$0xff]  ;;  %v480_v30 = vld [vmem:[%s1097_s4] ss:$0 sm:$0xff] }
  0x5c   :  { %705 = vmatpush3.bf16.msra.mxu0 %v704_v28  ;;  %v770_v26 = vpack.c.bf16 %v382_v25, %v381_v24  ;;  %v384_v28 = vld [vmem:[#allocation8 + $0x38] sm:$0xff]  ;;  %v385_v36 = vld [vmem:[#allocation8 + $0x40] sm:$0xff]  ;;  %v387_v39 = vld [vmem:[#allocation8 + $0x50] sm:$0xff] }
  0x5d   :  { %706 = vmatprep.subr.bf16.mxu0 %v902_v0  ;;  %v773_v29 = vpack.c.bf16 %v384_v28, %v383_v27  ;;  %v388_v40 = vld [vmem:[#allocation8 + $0x58] sm:$0xff]  ;;  %v390_v43 = vld [vmem:[#allocation8 + $0x68] sm:$0xff] }
  0x5e   :  { %729 = vmatpush3.bf16.msra.mxu1 %v728_v37  ;;  %v386_v37 = vld [vmem:[#allocation8 + $0x48] sm:$0xff]  ;;  %v392_v46 = vld [vmem:[#allocation8 + $0x78] sm:$0xff] }
  0x5f   :  { %730 = vmatprep.subr.bf16.mxu1 %v902_v0 }
  0x60   :  { %708 = vmatpush3.bf16.msra.mxu0 %v707_v34 }
  0x61   :  { %709 = vmatprep.subr.bf16.mxu0 %v902_v0 }
  0x62   :  { %732 = vmatpush3.bf16.msra.mxu1 %v731_v45  ;;  %v391_v45 = vld [vmem:[#allocation8 + $0x70] sm:$0xff] }
  0x63   :  { %733 = vmatprep.subr.bf16.mxu1 %v902_v0  ;;  %v785_v47 = vpack.c.bf16 %v392_v46, %v391_v45 }
  0x64   :  { %711 = vmatpush3.bf16.msra.mxu0 %v710_v38  ;;  %v776_v38 = vpack.c.bf16 %v386_v37, %v385_v36 }
  0x65   :  { %712 = vmatprep.subr.bf16.mxu0 %v902_v0 }
  0x66   :  { %735 = vmatpush3.bf16.msra.mxu1 %v734_v48  ;;  %v481_v48 = vld [vmem:[%s1099_s6] ss:$0 sm:$0xff] }
  0x67   :  { %736 = vmatprep.subr.bf16.mxu1 %v902_v0 }
  0x68   :  { %714 = vmatpush3.bf16.msra.mxu0 %v713_v41  ;;  %v779_v41 = vpack.c.bf16 %v388_v40, %v387_v39 }
  0x69   :  { %739 = vmatprep.subr.bf16.mxu0 %v902_v0 }
  0x6a   :  { %738 = vmatpush3.bf16.msra.mxu1 %v737_v51 }
  0x6b   :  { %584 = vmatmul.mubr.f32.vlgmr.msra.gmra.mrb[0].mxu0 %v91_v42  ;;  %763 = vmatprep.subr.bf16.mxu1 %v902_v0  ;;  %v389_v42 = vld [vmem:[#allocation8 + $0x60] sm:$0xff] }
  0x6c   :  { %653 = vmatprep.mubr.msk.f32.mxu0 %vm904_vm0, %v903_v1  ;;  %741 = vmatpush3.bf16.msra.mxu0 %v740_v55  ;;  %v782_v44 = vpack.c.bf16 %v390_v43, %v389_v42  ;;  %v482_v55 = vld [vmem:[%s1101_s8] ss:$0 sm:$0xff] }
  0x6d   :  { %742 = vmatprep.subr.bf16.mxu0 %v902_v0 }
  0x70   :  { %744 = vmatpush3.bf16.msra.mxu0 %v743_v57 }
  0x71   :  { %745 = vmatprep.subr.bf16.mxu0 %v902_v0 }
  0x74   :  { %747 = vmatpush3.bf16.msra.mxu0 %v746_v60 }
  0x75   :  { %748 = vmatprep.subr.bf16.mxu0 %v902_v0 }
  0x78   :  { %750 = vmatpush3.bf16.msra.mxu0 %v749_v63 }
  0x79   :  { %751 = vmatprep.subr.bf16.mxu0 %v902_v0 }
  0x7c   :  { %753 = vmatpush3.bf16.msra.mxu0 %v752_v9 }
  0x7d   :  { %754 = vmatprep.subr.bf16.mxu0 %v902_v0 }
  0x80   :  { %756 = vmatpush3.bf16.msra.mxu0 %v755_v12 }
  0x81   :  { %757 = vmatprep.subr.bf16.mxu0 %v902_v0 }
  0x84   :  { %759 = vmatpush3.bf16.msra.mxu0 %v758_v15 }
  0x85   :  { %760 = vmatprep.subr.bf16.mxu0 %v902_v0 }
  0x88   :  { %762 = vmatpush3.bf16.msra.mxu0 %v761_v18 }
 0x13e   :  { %v181_v3 = vpop.f32.mrb[0].mxu0 }
 0x13f   :  { %v182_v4 = vadd.f32 %v479_v2, %v181_v3  ;;  %v585_v5 = vpop.f32.mrb[1].mxu0 }
 0x141   :  { %796 = vtanh.f32 %v182_v4 }
 0x14b   :  { %v1064_v6 = vpop.eup %796 }
 0x14c   :  { %619 = vmatmul.mubr.f32.vlgmr.msra.gmra.mrb[0].mxu1 %v1064_v6 }
 0x14d   :  { %688 = vmatprep.mubr.msk.f32.mxu1 %vm904_vm0, %v903_v1  ;;  %v377_v1 = vld [vmem:[#allocation8] sm:$0xff] }
 0x14e   :  { %v764_v21 = vpack.c.bf16 %v378_v19, %v377_v1 }
 0x150   :  { %765 = vmatpush3.bf16.msra.mxu1 %v764_v21 }
 0x151   :  { %766 = vmatprep.subr.bf16.mxu1 %v902_v0 }
 0x154   :  { %768 = vmatpush3.bf16.msra.mxu1 %v767_v23 }
 0x155   :  { %769 = vmatprep.subr.bf16.mxu1 %v902_v0 }
 0x158   :  { %771 = vmatpush3.bf16.msra.mxu1 %v770_v26 }
 0x159   :  { %772 = vmatprep.subr.bf16.mxu1 %v902_v0 }
 0x15c   :  { %774 = vmatpush3.bf16.msra.mxu1 %v773_v29 }
 0x15d   :  { %775 = vmatprep.subr.bf16.mxu1 %v902_v0 }
 0x160   :  { %777 = vmatpush3.bf16.msra.mxu1 %v776_v38 }
 0x161   :  { %778 = vmatprep.subr.bf16.mxu1 %v902_v0 }
 0x164   :  { %780 = vmatpush3.bf16.msra.mxu1 %v779_v41 }
 0x165   :  { %781 = vmatprep.subr.bf16.mxu1 %v902_v0 }
 0x168   :  { %783 = vmatpush3.bf16.msra.mxu1 %v782_v44 }
 0x169   :  { %784 = vmatprep.subr.bf16.mxu1 %v902_v0 }
 0x16c   :  { %786 = vmatpush3.bf16.msra.mxu1 %v785_v47 }
 0x21f   :  { %v275_v31 = vpop.f32.mrb[0].mxu1 }
 0x220   :  { %v276_v32 = vadd.f32 %v480_v30, %v275_v31  ;;  %v620_v33 = vpop.f32.mrb[1].mxu1 }
 0x222   :  { %798 = vtanh.f32 %v276_v32 }
 0x22c   :  { %v799_v34 = vpop.eup %798 }
 0x22d   :  { %v280_v35 = vadd.f32 %v799_v34, %v1064_v6 }
 0x22f   :  { %654 = vmatmul.mubr.f32.vlgmr.msra.gmra.mrb[2].mxu0 %v280_v35 }
 0x302   :  { %v370_v49 = vpop.f32.mrb[2].mxu0 }
 0x303   :  { %v371_v50 = vadd.f32 %v481_v48, %v370_v49  ;;  %v655_v51 = vpop.f32.mrb[3].mxu0 }
 0x305   :  { %800 = vtanh.f32 %v371_v50 }
 0x30f   :  { %v801_v52 = vpop.eup %800 }
 0x310   :  { %v375_v53 = vadd.f32 %v801_v52, %v1064_v6 }
 0x312   :  { %v376_v54 = vadd.f32 %v375_v53, %v280_v35 }
 0x314   :  { %689 = vmatmul.mubr.f32.vlgmr.msra.gmra.mrb[2].mxu1 %v376_v54 }
 0x3e7   :  { %v466_v56 = vpop.f32.mrb[2].mxu1 }
 0x3e8   :  { %v467_v0 = vadd.f32 %v482_v55, %v466_v56  ;;  %v690_v57 = vpop.f32.mrb[3].mxu1 }
 0x3ea   :  { %471 = vst.msk [vmem:[%s1102_s9] sm:$0xff] %vm470_vm2, %v467_v0 }
 0x3eb   :  { %476 = vsyncpa [#allocation4], 1 }
 0x3ec   :  { %477 = vsyncpa [#allocation6], 1 }
 0x3ed   :  { %478 = vsyncpa [#allocation9], 1 }

</bundles_post_ra>
